<compile_context>
chip_gen: v6e
topology: v6e:2x2x1
jax: 0.10.0
libtpu: 0.0.40
codegen_flags: <defaults>
</compile_context>

<pallas_src>
import jax
import jax.numpy as jnp
import numpy as np
from jax.experimental import pallas as pl
from jax.experimental.pallas import tpu as pltpu

BN_EPS = 1e-5


# ------------------------------------------------------------------ kernels

def _stats1_kernel(x_ref, w1t_ref, acc_ref):
    """acc[0] += per-channel sum(conv1(x)); acc[1] += per-channel sum(conv1(x)^2)."""
    @pl.when(pl.program_id(0) == 0)
    def _init():
        acc_ref[...] = jnp.zeros_like(acc_ref)

    md = w1t_ref.dtype
    h = jnp.dot(x_ref[...].astype(md), w1t_ref[...],
                preferred_element_type=jnp.float32)
    acc_ref[0:1, :] += jnp.sum(h, axis=0, keepdims=True)
    acc_ref[1:2, :] += jnp.sum(h * h, axis=0, keepdims=True)


def _stats2_kernel(x_ref, w1t_ref, w2t_ref, bn1_ref, a1_ref, acc_ref):
    """Same accumulation for conv2(PReLU(BN1(conv1(x))))."""
    @pl.when(pl.program_id(0) == 0)
    def _init():
        acc_ref[...] = jnp.zeros_like(acc_ref)

    md = w1t_ref.dtype
    h = jnp.dot(x_ref[...].astype(md), w1t_ref[...],
                preferred_element_type=jnp.float32)
    h = h * bn1_ref[0:1, :] + bn1_ref[1:2, :]            # folded BN1 (scale, shift)
    h = jnp.where(h >= 0.0, h, a1_ref[...] * h)          # PReLU
    h = jnp.dot(h.astype(md), w2t_ref[...],
                preferred_element_type=jnp.float32)
    acc_ref[0:1, :] += jnp.sum(h, axis=0, keepdims=True)
    acc_ref[1:2, :] += jnp.sum(h * h, axis=0, keepdims=True)


def _final_kernel(x_ref, w1t_ref, w2t_ref, bn1_ref, a1_ref, bn2_ref, a2_ref,
                  o_ref, h_scratch):
    """Full chain with folded BN stats + residual + PReLU + MaxPool1d(3), per row tile."""
    md = w1t_ref.dtype
    h = jnp.dot(x_ref[...].astype(md), w1t_ref[...],
                preferred_element_type=jnp.float32)
    h = h * bn1_ref[0:1, :] + bn1_ref[1:2, :]
    h = jnp.where(h >= 0.0, h, a1_ref[...] * h)
    h = jnp.dot(h.astype(md), w2t_ref[...],
                preferred_element_type=jnp.float32)
    h = h * bn2_ref[0:1, :] + bn2_ref[1:2, :]
    # Residual: re-read x from the VMEM tile here (keeps its live range short).
    h = h + x_ref[...].astype(jnp.float32)
    h = jnp.where(h >= 0.0, h, a2_ref[...] * h)

    # MaxPool1d(kernel=3, stride=3): rows are flattened (n, l) with L % 3 == 0 and the
    # row tile is a multiple of 3, so every pooling window is 3 consecutive rows of this
    # tile.  Stage into a tile-sized VMEM scratch and do three stride-3 sublane reads.
    h_scratch[...] = h
    r_out = o_ref.shape[0]
    p = jnp.maximum(
        jnp.maximum(h_scratch[pl.ds(0, r_out, 3), :],
                    h_scratch[pl.ds(1, r_out, 3), :]),
        h_scratch[pl.ds(2, r_out, 3), :])
    o_ref[...] = p.astype(o_ref.dtype)


# ------------------------------------------------------------------ wrapper helpers

def _choose_row_tile(n_rows, n_ch, row_tile_cap=None):
    """Largest divisor of n_rows that is a multiple of 24 (3 for the pooling windows, 8
    for sublane alignment of both the input tile and the rows/3 output tile) and fits the
    per-tile VMEM budget.  Falls back to one full-size tile."""
    if row_tile_cap is None:
        # Keep the f32 activation tile around ~1 MiB so the double-buffered per-step
        # footprint stays far below v7x's 64 MiB VMEM (and v5e/v6e scoped defaults).
        row_tile_cap = max(24, (1 << 20) // (4 * n_ch))
    cap = min(n_rows, int(row_tile_cap))
    for t in range(cap - cap % 24, 0, -24):
        if n_rows % t == 0:
            return t
    # TODO(synk): pad/mask rows for shapes with no 24-aligned row-tile divisor.
    return n_rows


def _fold_bn(sums, n_rows, gamma, beta):
    """Fold batch statistics + BN affine params into per-channel (scale, shift)."""
    mu = sums[0] / n_rows
    var = jnp.maximum(sums[1] / n_rows - mu * mu, 0.0)     # biased batch variance
    scale = gamma.astype(jnp.float32) * jax.lax.rsqrt(var + BN_EPS)
    shift = beta.astype(jnp.float32) - mu * scale
    return jnp.stack([scale, shift])                       # (2, C) float32


def _prelu_row(alpha, n_ch):
    a = jnp.asarray(alpha, jnp.float32).reshape(1, -1)
    return jnp.broadcast_to(a, (1, n_ch))


# ------------------------------------------------------------------ forward

def resnet_block_forward_nlc(x_nlc, params, *, matmul_dtype=jnp.float32,
                             row_tile_cap=None):
    """Channel-last entry point: x_nlc is (N, L, C); returns (N, L // 3, C).

    Keep activations channel-last end-to-end in the surrounding model -- this avoids a
    full HBM read+write NCL<->NLC transpose on each side of the block.  Set
    matmul_dtype=jnp.bfloat16 to feed the two k=1 convs to the MXU in bf16 (recommended
    on v6e/v7x); all BN / PReLU / pooling math stays in float32.
    """
    w1, _b1, g1, be1, a1, w2, _b2, g2, be2, a2 = params
    N, L, C = x_nlc.shape
    # TODO(synk): general L (MaxPool1d drops the per-sample tail when L % 3 != 0) would
    # need per-sample pooling groups; here we require L % 3 == 0.
    assert L % 3 == 0, "L must be a multiple of 3"
    assert w1.shape == (C, C) and w2.shape == (C, C), "residual add needs in_dims == out_dims"
    R = N * L
    n_rows = jnp.float32(R)

    x2d = x_nlc.reshape(R, C)        # free reshape (contiguous); no transpose
    # Pre-transposed weights so the kernels never transpose on the XLU.  The conv biases
    # b1/b2 are dropped: training-mode BN subtracts the batch mean immediately after each
    # conv, so they cancel exactly.
    w1t = jnp.asarray(w1, jnp.float32).T.astype(matmul_dtype)
    w2t = jnp.asarray(w2, jnp.float32).T.astype(matmul_dtype)
    a1r = _prelu_row(a1, C)
    a2r = _prelu_row(a2, C)

    tr = _choose_row_tile(R, C, row_tile_cap)
    grid = (R // tr,)
    x_spec = pl.BlockSpec((tr, C), lambda i: (i, 0))
    # Small parameters: constant index_map -> block stays resident (no per-step re-DMA).
    w_spec = pl.BlockSpec((C, C), lambda i: (0, 0))
    v2_spec = pl.BlockSpec((2, C), lambda i: (0, 0))
    v1_spec = pl.BlockSpec((1, C), lambda i: (0, 0))
    acc_spec = pl.BlockSpec((2, C), lambda i: (0, 0))
    acc_shape = jax.ShapeDtypeStruct((2, C), jnp.float32)

    tile_bytes = tr * C * 4
    vmem_limit = int(min(64 << 20, max(16 << 20, 16 * tile_bytes)))
    reduce_params = pltpu.CompilerParams(
        dimension_semantics=("arbitrary",), vmem_limit_bytes=vmem_limit)
    parallel_params = pltpu.CompilerParams(
        dimension_semantics=("parallel",), vmem_limit_bytes=vmem_limit)

    # Pass 1: BN1 batch statistics (per-channel sum / sum-of-squares of conv1(x)).
    sums1 = pl.pallas_call(
        _stats1_kernel,
        out_shape=acc_shape,
        grid_spec=pltpu.PrefetchScalarGridSpec(
            num_scalar_prefetch=0, grid=grid,
            in_specs=[x_spec, w_spec],
            out_specs=acc_spec),
        compiler_params=reduce_params,
    )(x2d, w1t)
    bn1 = _fold_bn(sums1, n_rows, g1, be1)

    # Pass 2: BN2 batch statistics.
    sums2 = pl.pallas_call(
        _stats2_kernel,
        out_shape=acc_shape,
        grid_spec=pltpu.PrefetchScalarGridSpec(
            num_scalar_prefetch=0, grid=grid,
            in_specs=[x_spec, w_spec, w_spec, v2_spec, v1_spec],
            out_specs=acc_spec),
        compiler_params=reduce_params,
    )(x2d, w1t, w2t, bn1, a1r)
    bn2 = _fold_bn(sums2, n_rows, g2, be2)

    # Pass 3: normalize + residual + PReLU + MaxPool1d(3); row tiles are independent.
    out2d = pl.pallas_call(
        _final_kernel,
        out_shape=jax.ShapeDtypeStruct((R // 3, C), x_nlc.dtype),
        grid_spec=pltpu.PrefetchScalarGridSpec(
            num_scalar_prefetch=0, grid=grid,
            in_specs=[x_spec, w_spec, w_spec, v2_spec, v1_spec, v2_spec, v1_spec],
            out_specs=pl.BlockSpec((tr // 3, C), lambda i: (i, 0)),
            scratch_shapes=[pltpu.VMEM((tr, C), jnp.float32)]),
        compiler_params=parallel_params,
    )(x2d, w1t, w2t, bn1, a1r, bn2, a2r)

    return out2d.reshape(N, L // 3, C)


def resnet_block_forward_ncl(x_ncl, params, **kwargs):
    """PyTorch-layout adapter: (N, C, L) -> (N, C, L // 3).  The two transposes here cost
    a full HBM read+write each -- production callers should use the NLC entry point."""
    y = resnet_block_forward_nlc(jnp.transpose(x_ncl, (0, 2, 1)), params, **kwargs)
    return jnp.transpose(y, (0, 2, 1))


# ------------------------------------------------------------------ pure-JAX reference

def resnet_block_reference(x_ncl, params):
    """Pure-JAX reference with the PyTorch module's semantics (NCL layout, conv biases
    included, training-mode BatchNorm)."""
    w1, b1, g1, be1, a1, w2, b2, g2, be2, a2 = params

    def bn(h, g, be):
        mu = jnp.mean(h, axis=(0, 2), keepdims=True)
        var = jnp.mean((h - mu) ** 2, axis=(0, 2), keepdims=True)
        return (h - mu) * jax.lax.rsqrt(var + BN_EPS) * g[None, :, None] + be[None, :, None]

    def prelu(h, a):
        return jnp.where(h >= 0, h, a * h)

    h = jnp.einsum("oc,ncl->nol", w1, x_ncl) + b1[None, :, None]
    h = prelu(bn(h, g1, be1), a1)
    h = jnp.einsum("oc,ncl->nol", w2, h) + b2[None, :, None]
    h = bn(h, g2, be2)
    h = prelu(h + x_ncl, a2)
    N, C, L = h.shape
    Lp = (L // 3) * 3
    return jnp.max(h[:, :, :Lp].reshape(N, C, L // 3, 3), axis=-1)


# ------------------------------------------------------------------ demo / check

if __name__ == "__main__":
    # The residual add requires in_dims == out_dims; spex uses >= 128 channels, so the
    # channel-last layout is lane-dense (unmasked stores, full vregs).
    N, C, L = 2, 128, 96
    key = jax.random.PRNGKey(0)
    ks = jax.random.split(key, 9)

    params = (
        0.1 * jax.random.normal(ks[0], (C, C), jnp.float32),       # w1 (out, in), k=1
        0.1 * jax.random.normal(ks[1], (C,), jnp.float32),         # b1 (cancelled by BN1)
        1.0 + 0.1 * jax.random.normal(ks[2], (C,), jnp.float32),   # bn1 gamma
        0.1 * jax.random.normal(ks[3], (C,), jnp.float32),         # bn1 beta
        jnp.asarray(0.25, jnp.float32),                            # prelu1 alpha (PyTorch default)
        0.1 * jax.random.normal(ks[4], (C, C), jnp.float32),       # w2
        0.1 * jax.random.normal(ks[5], (C,), jnp.float32),         # b2 (cancelled by BN2)
        1.0 + 0.1 * jax.random.normal(ks[6], (C,), jnp.float32),   # bn2 gamma
        0.1 * jax.random.normal(ks[7], (C,), jnp.float32),         # bn2 beta
        jnp.asarray(0.25, jnp.float32),                            # final prelu alpha
    )
    x = jax.random.normal(ks[8], (N, C, L), jnp.float32)

    ref = jax.block_until_ready(resnet_block_reference(x, params))

    # 1) Default tiling (single row tile at this small size), f32 matmuls.
    out = jax.block_until_ready(resnet_block_forward_ncl(x, params))
    assert out.shape == (N, C, L // 3), out.shape
    np.testing.assert_allclose(np.asarray(out), np.asarray(ref), rtol=1e-4, atol=1e-4)

    # 2) Force a multi-tile grid (4 tiles of 48 rows) to exercise the pipelined /
    #    accumulator path.
    out_tiled = jax.block_until_ready(
        resnet_block_forward_ncl(x, params, row_tile_cap=48))
    np.testing.assert_allclose(np.asarray(out_tiled), np.asarray(ref), rtol=1e-4, atol=1e-4)

    # 3) bf16-fed MXU path (v6e/v7x recommendation); BN/PReLU/pool math stays f32, so
    #    only matmul rounding differs -> loose tolerance (the strict check is 1/2 above).
    out_bf16 = jax.block_until_ready(
        resnet_block_forward_ncl(x, params, matmul_dtype=jnp.bfloat16))
    np.testing.assert_allclose(np.asarray(out_bf16), np.asarray(ref), rtol=1e-1, atol=1e-1)

    print("KERNEL_OK")
</pallas_src>

<mosaic_0001>
module attributes {stable_mosaic.version = 11 : i64} {
  func.func @_stats1_kernel(%arg0: i32, %arg1: memref<192x128xf32, #tpu.memory_space<vmem>>, %arg2: memref<128x128xf32, #tpu.memory_space<vmem>>, %arg3: memref<2x128xf32, #tpu.memory_space<vmem>>) attributes {dimension_semantics = [#tpu.dimension_semantics<arbitrary>], iteration_bounds = array<i64: 1>, scalar_prefetch = 0 : i64, scratch_operands = 0 : i64, tpu.core_type = #tpu.core_type<tc>, window_params = [{transform_indices = @transform_0, window_bounds = array<i64: 192, 128>}, {pipeline_mode = #tpu.pipeline_mode<synchronous>, transform_indices = @transform_1, window_bounds = array<i64: 128, 128>}, {pipeline_mode = #tpu.pipeline_mode<synchronous>, transform_indices = @transform_2, window_bounds = array<i64: 2, 128>}]} {
    %c0_i32 = arith.constant 0 : i32
    %0 = arith.cmpi eq, %arg0, %c0_i32 : i32
    %1 = arith.extui %0 : i1 to i32
    %c0_i32_0 = arith.constant 0 : i32
    %2 = arith.cmpi ne, %1, %c0_i32_0 : i32
    scf.if %2 {
      %cst_13 = arith.constant 0.000000e+00 : f32
      %17 = vector.broadcast %cst_13 : f32 to vector<2x128xf32>
      %c0_14 = arith.constant 0 : index
      %c0_15 = arith.constant 0 : index
      %18 = vector.load %arg3[%c0_14, %c0_15] : memref<2x128xf32, #tpu.memory_space<vmem>>, vector<2x128xf32>
      tpu.vector_store %arg3[%c0_14, %c0_15], %17 {strides = array<i32>} : memref<2x128xf32, #tpu.memory_space<vmem>>, vector<2x128xf32>,
    } else {
    }
    %c0 = arith.constant 0 : index
    %c0_1 = arith.constant 0 : index
    %3 = vector.load %arg1[%c0, %c0_1] : memref<192x128xf32, #tpu.memory_space<vmem>>, vector<192x128xf32>
    %c0_2 = arith.constant 0 : index
    %c0_3 = arith.constant 0 : index
    %4 = vector.load %arg2[%c0_2, %c0_3] : memref<128x128xf32, #tpu.memory_space<vmem>>, vector<128x128xf32>
    %cst = arith.constant dense<0.000000e+00> : vector<192x128xf32>
    %5 = tpu.matmul %3, %4, %cst {dimension_numbers = #tpu.dot_dimension_numbers<[1], [0], [0], [1], [0, 0, 1, 1], [], []>} : vector<192x128xf32>, vector<128x128xf32>, vector<192x128xf32> -> vector<192x128xf32>
    %c0_4 = arith.constant 0 : index
    %c0_5 = arith.constant 0 : index
    %6 = vector.load %arg3[%c0_4, %c0_5] : memref<2x128xf32, #tpu.memory_space<vmem>>, vector<1x128xf32>
    %cst_6 = arith.constant dense<0.000000e+00> : vector<128xf32>
    %7 = vector.multi_reduction <add>, %5, %cst_6 [0] : vector<192x128xf32> to vector<128xf32>
    %8 = vector.shape_cast %7 : vector<128xf32> to vector<1x128xf32>
    %9 = arith.addf %6, %8 : vector<1x128xf32>
    %c0_7 = arith.constant 0 : index
    %c0_8 = arith.constant 0 : index
    %10 = vector.load %arg3[%c0_7, %c0_8] : memref<2x128xf32, #tpu.memory_space<vmem>>, vector<1x128xf32>
    tpu.vector_store %arg3[%c0_7, %c0_8], %9 {strides = array<i32>} : memref<2x128xf32, #tpu.memory_space<vmem>>, vector<1x128xf32>,
    %c1 = arith.constant 1 : index
    %c0_9 = arith.constant 0 : index
    %11 = vector.load %arg3[%c1, %c0_9] : memref<2x128xf32, #tpu.memory_space<vmem>>, vector<1x128xf32>
    %12 = arith.mulf %5, %5 : vector<192x128xf32>
    %cst_10 = arith.constant dense<0.000000e+00> : vector<128xf32>
    %13 = vector.multi_reduction <add>, %12, %cst_10 [0] : vector<192x128xf32> to vector<128xf32>
    %14 = vector.shape_cast %13 : vector<128xf32> to vector<1x128xf32>
    %15 = arith.addf %11, %14 : vector<1x128xf32>
    %c1_11 = arith.constant 1 : index
    %c0_12 = arith.constant 0 : index
    %16 = vector.load %arg3[%c1_11, %c0_12] : memref<2x128xf32, #tpu.memory_space<vmem>>, vector<1x128xf32>
    tpu.vector_store %arg3[%c1_11, %c0_12], %15 {strides = array<i32>} : memref<2x128xf32, #tpu.memory_space<vmem>>, vector<1x128xf32>,
    return
  }
  func.func @transform_0(%arg0: i32) -> (i32, i32) {
    %c0_i32 = arith.constant 0 : i32
    %c0_i32_0 = arith.constant 0 : i32
    return %arg0, %c0_i32 : i32, i32
  }
  func.func @transform_1(%arg0: i32) -> (i32, i32) {
    %c0_i32 = arith.constant 0 : i32
    %c0_i32_0 = arith.constant 0 : i32
    %c0_i32_1 = arith.constant 0 : i32
    return %c0_i32, %c0_i32_0 : i32, i32
  }
  func.func @transform_2(%arg0: i32) -> (i32, i32) {
    %c0_i32 = arith.constant 0 : i32
    %c0_i32_0 = arith.constant 0 : i32
    %c0_i32_1 = arith.constant 0 : i32
    return %c0_i32, %c0_i32_0 : i32, i32
  }
}

</mosaic_0001>

<bundles_post_ra>
// kernel: tpu_custom_call.1
= control target key start
LH: loop header
LB: loop body
LE: loop exit
PB: predicated region body
PF: predicated region fallthrough
CT: control target
= control target key end

     0   :  { %7 = vsyncpa [#allocation3], 0  ;;  %s616_s0 = inlined_call_operand.hbm [shape: f32[192,128], index: 0, kind: input, shape index: {}]   ;;  %s617_s1 = inlined_call_operand.hbm [shape: f32[128,128], index: 1, kind: input, shape index: {}]   ;;  %s618_s2 = inlined_call_operand.hbm [shape: f32[2,128], index: 2, kind: output, shape index: {}]  }
   0x1   :  { %8 = vsyncpa [#allocation6], 0 }
   0x2   :  { %9 = vsyncpa [#allocation4], 0  ;;  %s586_s9 = smov [#allocation2]  }
   0x3   :  { %s15_s10 = sshll.u32 %s586_s9, 4  ;;  %s16_s10 = int_to_ptr.vmem [resolvable:$true] %s15_s10 }
   0x4   :  { %s528_s11 = scalar_lea.vmem %s16_s10, 3072  ;;  %p533_p1 = scmp.lt.s32.totalorder %s16_s10, %s16_s10 }
   0x5   :  { %p529_p0 = scmp.ne.s32.totalorder %s16_s10, %s528_s11  ;;  %p534_p2 = scmp.lt.s32.totalorder %s528_s11, %s528_s11 }
   0x7   :  { %p535_p3 = por %p534_p2, %p533_p1 }
   0x9   :  { %p536_p4 = pnand %p535_p3, %p529_p0 }
   0xb   :  { %539 = shalt.err (!%p536_p4)
}
   0xc   :  { %s587_s12 = smov 128   ;;  %s588_s13 = smov 8  }
   0xd   :  { %21 = dma.hbm_to_vmem [thread:$0]  %s616_s0, 3072, %s16_s10, [#allocation3], %s587_s12, %s587_s12, %s588_s13  }
   0xe   :  { %s589_s16 = smov [#allocation5]  }
   0xf   :  { %s27_s17 = sshll.u32 %s589_s16, 4  ;;  %s28_s17 = int_to_ptr.vmem [resolvable:$true] %s27_s17 }
  0x10   :  { %s548_s18 = scalar_lea.vmem %s28_s17, 2048  ;;  %p553_p6 = scmp.lt.s32.totalorder %s28_s17, %s28_s17 }
  0x11   :  { %p549_p5 = scmp.ne.s32.totalorder %s28_s17, %s548_s18  ;;  %p554_p7 = scmp.lt.s32.totalorder %s548_s18, %s548_s18 }
  0x13   :  { %p555_p8 = por %p554_p7, %p553_p6 }
  0x15   :  { %p556_p9 = pnand %p555_p8, %p549_p5 }
  0x17   :  { %559 = shalt.err (!%p556_p9)
}
  0x18   :  { %33 = dma.hbm_to_vmem [thread:$0]  %s617_s1, 2048, %s28_s17, [#allocation6], %s587_s12, %s587_s12, %s588_s13  }
  0x19   :  { %580 = dma.done.wait [#allocation3], 3072  }
  0x1a   :  { %581 = vsyncadd [#allocation3], 4294964224 }
  0x1b   :  { %582 = dma.done.wait [#allocation6], 2048  }
  0x1c   :  { %583 = vsyncadd [#allocation6], 4294965248  ;;  %v84_v0 = vld [vmem:[#allocation5 + $0x78] sm:$0xff]  ;;  %v83_v1 = vld [vmem:[#allocation5 + $0x70] sm:$0xff]  ;;  %v590_v40 = vmov 0.0   ;;  %s591_s0 = smov [#allocation7]  }
  0x1d   :  { %414 = vmatprep.subr.mxu0 %v84_v0  ;;  %482 = vmatprep.subr.mxu1 %v84_v0  ;;  %v82_v2 = vld [vmem:[#allocation5 + $0x68] sm:$0xff]  ;;  %v81_v3 = vld [vmem:[#allocation5 + $0x60] sm:$0xff]  ;;  %v80_v4 = vld [vmem:[#allocation5 + $0x58] sm:$0xff]  ;;  %44 = vst [vmem:[#allocation7] sm:$0x3] %v590_v40  ;;  %s364_s1 = sshll.u32 %s591_s0, 4  ;;  %s365_s1 = int_to_ptr.vmem [resolvable:$true] %s364_s1 }
  0x1e   :  { %415 = vmatpush3.msra.mxu0 %v84_v0  ;;  %498 = vmatpush3.msra.mxu1 %v84_v0  ;;  %v79_v5 = vld [vmem:[#allocation5 + $0x50] sm:$0xff]  ;;  %v45_v6 = vld [vmem:[#allocation2] sm:$0xff]  ;;  %v78_v7 = vld [vmem:[#allocation5 + $0x48] sm:$0xff]  ;;  %s560_s21 = scalar_lea.vmem %s365_s1, 32  ;;  %p565_p11 = scmp.lt.s32.totalorder %s365_s1, %s365_s1 }
  0x1f   :  { %416 = vmatprep.subr.mxu0 %v83_v1  ;;  %483 = vmatprep.subr.mxu1 %v83_v1  ;;  %v77_v8 = vld [vmem:[#allocation5 + $0x40] sm:$0xff]  ;;  %v76_v9 = vld [vmem:[#allocation5 + $0x38] sm:$0xff]  ;;  %v75_v10 = vld [vmem:[#allocation5 + $0x30] sm:$0xff]  ;;  %p561_p10 = scmp.ne.s32.totalorder %s365_s1, %s560_s21  ;;  %p566_p12 = scmp.lt.s32.totalorder %s560_s21, %s560_s21 }
  0x20   :  { %417 = vmatpush3.msra.mxu0 %v83_v1  ;;  %499 = vmatpush3.msra.mxu1 %v83_v1  ;;  %v74_v11 = vld [vmem:[#allocation5 + $0x28] sm:$0xff]  ;;  %v73_v12 = vld [vmem:[#allocation5 + $0x20] sm:$0xff]  ;;  %v72_v13 = vld [vmem:[#allocation5 + $0x18] sm:$0xff] }
  0x21   :  { %418 = vmatprep.subr.mxu0 %v82_v2  ;;  %484 = vmatprep.subr.mxu1 %v82_v2  ;;  %v71_v14 = vld [vmem:[#allocation5 + $0x10] sm:$0xff]  ;;  %v70_v15 = vld [vmem:[#allocation5 + $0x8] sm:$0xff]  ;;  %v69_v16 = vld [vmem:[#allocation5] sm:$0xff]  ;;  %p567_p13 = por %p566_p12, %p565_p11 }
  0x22   :  { %419 = vmatpush3.msra.mxu0 %v82_v2  ;;  %500 = vmatpush3.msra.mxu1 %v82_v2  ;;  %v46_v17 = vld [vmem:[#allocation2 + $0x8] sm:$0xff]  ;;  %v47_v18 = vld [vmem:[#allocation2 + $0x10] sm:$0xff]  ;;  %v57_v19 = vld [vmem:[#allocation2 + $0x60] sm:$0xff] }
  0x23   :  { %420 = vmatprep.subr.mxu0 %v81_v3  ;;  %485 = vmatprep.subr.mxu1 %v81_v3  ;;  %v58_v20 = vld [vmem:[#allocation2 + $0x68] sm:$0xff]  ;;  %v59_v21 = vld [vmem:[#allocation2 + $0x70] sm:$0xff]  ;;  %v48_v22 = vld [vmem:[#allocation2 + $0x18] sm:$0xff]  ;;  %p568_p0 = pnand %p567_p13, %p561_p10 }
  0x24   :  { %421 = vmatpush3.msra.mxu0 %v81_v3  ;;  %501 = vmatpush3.msra.mxu1 %v81_v3  ;;  %v49_v23 = vld [vmem:[#allocation2 + $0x20] sm:$0xff]  ;;  %v60_v24 = vld [vmem:[#allocation2 + $0x78] sm:$0xff]  ;;  %v50_v26 = vld [vmem:[#allocation2 + $0x28] sm:$0xff] }
  0x25   :  { %422 = vmatprep.subr.mxu0 %v80_v4  ;;  %486 = vmatprep.subr.mxu1 %v80_v4  ;;  %v61_v25 = vld [vmem:[#allocation2 + $0x80] sm:$0xff]  ;;  %v51_v27 = vld [vmem:[#allocation2 + $0x30] sm:$0xff]  ;;  %v62_v28 = vld [vmem:[#allocation2 + $0x88] sm:$0xff] }
  0x26   :  { %423 = vmatpush3.msra.mxu0 %v80_v4  ;;  %502 = vmatpush3.msra.mxu1 %v80_v4  ;;  %v63_v29 = vld [vmem:[#allocation2 + $0x90] sm:$0xff]  ;;  %v52_v30 = vld [vmem:[#allocation2 + $0x38] sm:$0xff]  ;;  %v53_v31 = vld [vmem:[#allocation2 + $0x40] sm:$0xff] }
  0x27   :  { %424 = vmatprep.subr.mxu0 %v79_v5  ;;  %446 = vmatprep.mubr.f32.mxu0 %v45_v6  ;;  %v64_v32 = vld [vmem:[#allocation2 + $0x98] sm:$0xff]  ;;  %v65_v33 = vld [vmem:[#allocation2 + $0xa0] sm:$0xff]  ;;  %v54_v34 = vld [vmem:[#allocation2 + $0x48] sm:$0xff] }
  0x28   :  { %425 = vmatpush3.msra.mxu0 %v79_v5  ;;  %487 = vmatprep.subr.mxu1 %v79_v5  ;;  %v55_v35 = vld [vmem:[#allocation2 + $0x50] sm:$0xff]  ;;  %v66_v36 = vld [vmem:[#allocation2 + $0xa8] sm:$0xff]  ;;  %v56_v38 = vld [vmem:[#allocation2 + $0x58] sm:$0xff] }
  0x29   :  { %426 = vmatprep.subr.mxu0 %v78_v7  ;;  %503 = vmatpush3.msra.mxu1 %v79_v5  ;;  %v67_v37 = vld [vmem:[#allocation2 + $0xb0] sm:$0xff]  ;;  %v68_v39 = vld [vmem:[#allocation2 + $0xb8] sm:$0xff] }
  0x2a   :  { %427 = vmatpush3.msra.mxu0 %v78_v7  ;;  %488 = vmatprep.subr.mxu1 %v78_v7 }
  0x2b   :  { %428 = vmatprep.subr.mxu0 %v77_v8  ;;  %504 = vmatpush3.msra.mxu1 %v78_v7 }
  0x2c   :  { %429 = vmatpush3.msra.mxu0 %v77_v8  ;;  %489 = vmatprep.subr.mxu1 %v77_v8 }
  0x2d   :  { %430 = vmatprep.subr.mxu0 %v76_v9  ;;  %505 = vmatpush3.msra.mxu1 %v77_v8 }
  0x2e   :  { %431 = vmatpush3.msra.mxu0 %v76_v9  ;;  %490 = vmatprep.subr.mxu1 %v76_v9 }
  0x2f   :  { %432 = vmatprep.subr.mxu0 %v75_v10  ;;  %506 = vmatpush3.msra.mxu1 %v76_v9 }
  0x30   :  { %433 = vmatpush3.msra.mxu0 %v75_v10  ;;  %491 = vmatprep.subr.mxu1 %v75_v10 }
  0x31   :  { %434 = vmatprep.subr.mxu0 %v74_v11  ;;  %507 = vmatpush3.msra.mxu1 %v75_v10 }
  0x32   :  { %435 = vmatpush3.msra.mxu0 %v74_v11  ;;  %492 = vmatprep.subr.mxu1 %v74_v11 }
  0x33   :  { %436 = vmatprep.subr.mxu0 %v73_v12  ;;  %508 = vmatpush3.msra.mxu1 %v74_v11 }
  0x34   :  { %437 = vmatpush3.msra.mxu0 %v73_v12  ;;  %493 = vmatprep.subr.mxu1 %v73_v12 }
  0x35   :  { %438 = vmatprep.subr.mxu0 %v72_v13  ;;  %509 = vmatpush3.msra.mxu1 %v73_v12 }
  0x36   :  { %439 = vmatpush3.msra.mxu0 %v72_v13  ;;  %494 = vmatprep.subr.mxu1 %v72_v13 }
  0x37   :  { %440 = vmatprep.subr.mxu0 %v71_v14  ;;  %510 = vmatpush3.msra.mxu1 %v72_v13 }
  0x38   :  { %441 = vmatpush3.msra.mxu0 %v71_v14  ;;  %495 = vmatprep.subr.mxu1 %v71_v14 }
  0x39   :  { %442 = vmatprep.subr.mxu0 %v70_v15  ;;  %511 = vmatpush3.msra.mxu1 %v71_v14 }
  0x3a   :  { %443 = vmatpush3.msra.mxu0 %v70_v15  ;;  %496 = vmatprep.subr.mxu1 %v70_v15 }
  0x3b   :  { %444 = vmatprep.subr.mxu0 %v69_v16  ;;  %512 = vmatpush3.msra.mxu1 %v70_v15 }
  0x3c   :  { %445 = vmatpush3.msra.mxu0 %v69_v16  ;;  %497 = vmatprep.subr.mxu1 %v69_v16 }
  0x3d   :  { %447 = vmatmul.mubr.f32.vlgmr.msra.gmra.mxu0 %v46_v17  ;;  %513 = vmatpush3.msra.mxu1 %v69_v16 }
  0x3e   :  { %449 = vmatprep.mubr.f32.mxu0 %v47_v18  ;;  %464 = vmatprep.mubr.f32.mxu1 %v57_v19 }
  0x3f   :  { %465 = vmatmul.mubr.f32.vlgmr.msra.gmra.mxu1 %v58_v20 }
  0x40   :  { %467 = vmatprep.mubr.f32.mxu1 %v59_v21 }
  0x41   :  { %450 = vmatmul.mubr.f32.gmra.mxu0 %v48_v22 }
  0x42   :  { %452 = vmatprep.mubr.f32.mxu0 %v49_v23 }
  0x43   :  { %468 = vmatmul.mubr.f32.gmra.mxu1 %v60_v24 }
  0x44   :  { %470 = vmatprep.mubr.f32.mxu1 %v61_v25 }
  0x45   :  { %453 = vmatmul.mubr.f32.gmra.mxu0 %v50_v26 }
  0x46   :  { %455 = vmatprep.mubr.f32.mxu0 %v51_v27 }
  0x47   :  { %471 = vmatmul.mubr.f32.gmra.mxu1 %v62_v28 }
  0x48   :  { %473 = vmatprep.mubr.f32.mxu1 %v63_v29 }
  0x49   :  { %456 = vmatmul.mubr.f32.gmra.mxu0 %v52_v30 }
  0x4a   :  { %458 = vmatprep.mubr.f32.mxu0 %v53_v31 }
  0x4b   :  { %474 = vmatmul.mubr.f32.gmra.mxu1 %v64_v32 }
  0x4c   :  { %476 = vmatprep.mubr.f32.mxu1 %v65_v33 }
  0x4d   :  { %459 = vmatmul.mubr.f32.gmra.mxu0 %v54_v34 }
  0x4e   :  { %461 = vmatprep.mubr.f32.mxu0 %v55_v35 }
  0x4f   :  { %477 = vmatmul.mubr.f32.gmra.mxu1 %v66_v36 }
  0x50   :  { %479 = vmatprep.mubr.f32.mxu1 %v67_v37 }
  0x51   :  { %462 = vmatmul.mubr.f32.gmra.mxu0 %v56_v38 }
  0x53   :  { %480 = vmatmul.mubr.f32.gmra.mxu1 %v68_v39 }
  0xfd   :  { %v448_v41 = vpop.f32.mrf.mxu0 }
  0xfe   :  { %v304_v47 = vmul.f32 %v448_v41, %v448_v41 }
  0xff   :  { %v151_v42 = vpop.f32.mrf.mxu0  ;;  %v466_v43 = vpop.f32.mrf.mxu1 }
 0x100   :  { %v303_v44 = vmul.f32 %v151_v42, %v151_v42  ;;  %v271_v48 = vadd.f32 %v448_v41, %v151_v42  ;;  %v316_v33 = vmul.f32 %v466_v43, %v466_v43 }
 0x101   :  { %v451_v45 = vpop.f32.mrf.mxu0  ;;  %v211_v46 = vpop.f32.mrf.mxu1 }
 0x102   :  { %v327_v50 = vadd.f32 %v304_v47, %v303_v44  ;;  %v306_v55 = vmul.f32 %v451_v45, %v451_v45  ;;  %v315_v31 = vmul.f32 %v211_v46, %v211_v46 }
 0x103   :  { %v161_v49 = vpop.f32.mrf.mxu0  ;;  %v469_v54 = vpop.f32.mrf.mxu1 }
 0x104   :  { %v272_v51 = vadd.f32 %v271_v48, %v161_v49  ;;  %v305_v52 = vmul.f32 %v161_v49, %v161_v49  ;;  %v318_v40 = vmul.f32 %v469_v54, %v469_v54 }
 0x105   :  { %v454_v53 = vpop.f32.mrf.mxu0  ;;  %v221_v63 = vpop.f32.mrf.mxu1 }
 0x106   :  { %v328_v56 = vadd.f32 %v327_v50, %v305_v52  ;;  %v273_v57 = vadd.f32 %v451_v45, %v272_v51  ;;  %v308_v0 = vmul.f32 %v454_v53, %v454_v53  ;;  %v317_v37 = vmul.f32 %v221_v63, %v221_v63 }
 0x107   :  { %v171_v58 = vpop.f32.mrf.mxu0  ;;  %v472_v8 = vpop.f32.mrf.mxu1 }
 0x108   :  { %v274_v59 = vadd.f32 %v273_v57, %v171_v58  ;;  %v307_v60 = vmul.f32 %v171_v58, %v171_v58  ;;  %v329_v61 = vadd.f32 %v328_v56, %v306_v55  ;;  %v320_v49 = vmul.f32 %v472_v8, %v472_v8 }
 0x109   :  { %v457_v62 = vpop.f32.mrf.mxu0  ;;  %v231_v17 = vpop.f32.mrf.mxu1 }
 0x10a   :  { %v330_v1 = vadd.f32 %v329_v61, %v307_v60  ;;  %v275_v2 = vadd.f32 %v454_v53, %v274_v59  ;;  %v310_v9 = vmul.f32 %v457_v62, %v457_v62  ;;  %v319_v45 = vmul.f32 %v231_v17, %v231_v17 }
 0x10b   :  { %v181_v3 = vpop.f32.mrf.mxu0  ;;  %v475_v25 = vpop.f32.mrf.mxu1 }
 0x10c   :  { %v276_v4 = vadd.f32 %v275_v2, %v181_v3  ;;  %v309_v5 = vmul.f32 %v181_v3, %v181_v3  ;;  %v331_v6 = vadd.f32 %v330_v1, %v308_v0  ;;  %v322_v56 = vmul.f32 %v475_v25, %v475_v25 }
 0x10d   :  { %v460_v7 = vpop.f32.mrf.mxu0  ;;  %v241_v32 = vpop.f32.mrf.mxu1 }
 0x10e   :  { %v332_v10 = vadd.f32 %v331_v6, %v309_v5  ;;  %v277_v11 = vadd.f32 %v457_v62, %v276_v4  ;;  %v312_v18 = vmul.f32 %v460_v7, %v460_v7 }
 0x10f   :  { %v191_v12 = vpop.f32.mrf.mxu0  ;;  %v478_v39 = vpop.f32.mrf.mxu1 }
 0x110   :  { %v278_v13 = vadd.f32 %v277_v11, %v191_v12  ;;  %v311_v14 = vmul.f32 %v191_v12, %v191_v12  ;;  %v333_v15 = vadd.f32 %v332_v10, %v310_v9  ;;  %v324_v62 = vmul.f32 %v478_v39, %v478_v39 }
 0x111   :  { %v463_v16 = vpop.f32.mrf.mxu0  ;;  %v251_v48 = vpop.f32.mrf.mxu1 }
 0x112   :  { %v334_v19 = vadd.f32 %v333_v15, %v311_v14  ;;  %v279_v20 = vadd.f32 %v460_v7, %v278_v13  ;;  %v314_v26 = vmul.f32 %v463_v16, %v463_v16  ;;  %v323_v59 = vmul.f32 %v251_v48, %v251_v48 }
 0x113   :  { %v201_v21 = vpop.f32.mrf.mxu0  ;;  %v481_v55 = vpop.f32.mrf.mxu1 }
 0x114   :  { %v280_v22 = vadd.f32 %v279_v20, %v201_v21  ;;  %v313_v23 = vmul.f32 %v201_v21, %v201_v21  ;;  %v335_v24 = vadd.f32 %v334_v19, %v312_v18  ;;  %v326_v3 = vmul.f32 %v481_v55, %v481_v55  ;;  %v302_v19 = vld [vmem:[#allocation7 + $0x1] sm:$0x1] }
 0x115   :  { %v261_v61 = vpop.f32.mrf.mxu1 }
 0x116   :  { %v281_v27 = vadd.f32 %v463_v16, %v280_v22  ;;  %v336_v28 = vadd.f32 %v335_v24, %v313_v23  ;;  %v325_v1 = vmul.f32 %v261_v61, %v261_v61  ;;  %v270_v16 = vld [vmem:[#allocation7] sm:$0x1] }
 0x118   :  { %v337_v29 = vadd.f32 %v336_v28, %v314_v26  ;;  %v282_v30 = vadd.f32 %v281_v27, %v211_v46  ;;  %v321_v46 = vmul.f32 %v241_v32, %v241_v32 }
 0x11a   :  { %v338_v34 = vadd.f32 %v337_v29, %v315_v31  ;;  %v283_v35 = vadd.f32 %v466_v43, %v282_v30 }
 0x11c   :  { %v284_v36 = vadd.f32 %v283_v35, %v221_v63  ;;  %v339_v38 = vadd.f32 %v338_v34, %v316_v33 }
 0x11e   :  { %v340_v41 = vadd.f32 %v339_v38, %v317_v37  ;;  %v285_v42 = vadd.f32 %v469_v54, %v284_v36 }
 0x120   :  { %v286_v44 = vadd.f32 %v285_v42, %v231_v17  ;;  %v341_v47 = vadd.f32 %v340_v41, %v318_v40 }
 0x122   :  { %v342_v50 = vadd.f32 %v341_v47, %v319_v45  ;;  %v287_v51 = vadd.f32 %v472_v8, %v286_v44 }
 0x124   :  { %v288_v52 = vadd.f32 %v287_v51, %v241_v32  ;;  %v343_v53 = vadd.f32 %v342_v50, %v320_v49 }
 0x126   :  { %v344_v43 = vadd.f32 %v343_v53, %v321_v46  ;;  %v289_v57 = vadd.f32 %v475_v25, %v288_v52 }
 0x128   :  { %v290_v58 = vadd.f32 %v289_v57, %v251_v48  ;;  %v345_v60 = vadd.f32 %v344_v43, %v322_v56 }
 0x12a   :  { %v346_v54 = vadd.f32 %v345_v60, %v323_v59  ;;  %v291_v63 = vadd.f32 %v478_v39, %v290_v58 }
 0x12c   :  { %v292_v0 = vadd.f32 %v291_v63, %v261_v61  ;;  %v347_v2 = vadd.f32 %v346_v54, %v324_v62 }
 0x12e   :  { %v293_v4 = vadd.f32 %v481_v55, %v292_v0  ;;  %v348_v5 = vadd.f32 %v347_v2, %v325_v1 }
 0x130   :  { %v294_v6 = vrot.slane %v293_v4, 4  ;;  %v349_v7 = vadd.f32 %v348_v5, %v326_v3 }
 0x132   :  { %v295_v8 = vadd.f32 %v294_v6, %v293_v4  ;;  %v350_v9 = vrot.slane %v349_v7, 4 }
 0x134   :  { %v296_v10 = vrot.slane %v295_v8, 2  ;;  %v351_v11 = vadd.f32 %v350_v9, %v349_v7 }
 0x136   :  { %v297_v12 = vadd.f32 %v296_v10, %v295_v8  ;;  %v352_v13 = vrot.slane %v351_v11, 2 }
 0x138   :  { %v298_v14 = vrot.slane %v297_v12, 1  ;;  %v353_v15 = vadd.f32 %v352_v13, %v351_v11 }
 0x13a   :  { %v299_v17 = vadd.f32 %v298_v14, %v297_v12  ;;  %v354_v18 = vrot.slane %v353_v15, 1 }
 0x13c   :  { %v300_v20 = vadd.f32 %v299_v17, %v270_v16  ;;  %v355_v21 = vadd.f32 %v354_v18, %v353_v15 }
 0x13e   :  { %301 = vst [vmem:[#allocation7] sm:$0x1] %v300_v20  ;;  %v356_v22 = vadd.f32 %v355_v21, %v302_v19 }
 0x140   :  { %357 = vst [vmem:[#allocation7 + $0x1] sm:$0x1] %v356_v22 }
 0x141   :  { %571 = shalt.err (!%p568_p0)
}
 0x142   :  { %367 = dma.vmem_to_hbm [thread:$0]  %s365_s1, 32, %s618_s2, [#allocation4]  }
 0x143   :  { %584 = dma.done.wait [#allocation4], 32  }
 0x144   :  { %585 = vsyncadd [#allocation4], 4294967264 }
 0x145   :  { %371 = vsyncpa [#allocation3], 1 }
 0x146   :  { %372 = vsyncpa [#allocation6], 1 }
 0x147   :  { %373 = vsyncpa [#allocation4], 1 }

</bundles_post_ra>
